<compile_context>
chip_gen: v6e
topology: v6e:2x2x1
jax: 0.10.0
libtpu: 0.0.40
codegen_flags: <defaults>
</compile_context>

<pallas_src>
import functools

import jax
import jax.numpy as jnp
from jax import lax
from jax.experimental import pallas as pl
from jax.experimental.pallas import tpu as pltpu


def _vmem_params():
    """(row-block cap, vmem_limit_bytes) per chip generation; conservative on failure."""
    try:
        info = pltpu.get_tpu_info()
        cap_bytes = int(getattr(info, "vmem_capacity_bytes", 64 * 1024 * 1024))
    except Exception:
        cap_bytes = 64 * 1024 * 1024  # unknown -> treat as v7x-class (safe everywhere)
    if cap_bytes <= 80 * 1024 * 1024:
        # v7x-class: 64 MiB VMEM per TensorCore -> smaller slabs, modest scoped limit.
        return 256, min(48 * 1024 * 1024, int(cap_bytes * 3 // 4))
    # v5e / v6e: 128 MiB VMEM -> big row blocks, raise the scoped limit.
    return 512, 100 * 1024 * 1024


def _pick_block_rows(n: int, cap: int) -> int:
    """Largest multiple-of-8 divisor of N that is <= cap (keeps (8,128) tiling legal)."""
    best = None
    for tm in range(8, min(cap, n) + 1, 8):
        if n % tm == 0:
            best = tm
    return best if best is not None else n  # small / odd N: one block covering all rows


def _cms_loss_kernel(key_ref, row_ref, out_ref, *, batch_size: int, n_views: int,
                     inv_temp: float, block_rows: int, n_total: int,
                     apply_max_shift: bool):
    i = pl.program_id(0)
    inv_pos = 1.0 / float(n_views - 1)  # pos_count is the compile-time constant n_views-1

    # (TM, N) slab of the scaled Gram matrix on the MXU: (TM, Dp) x (Dp, N), bf16 inputs,
    # f32 accumulation.  The key is pre-normalized / pre-transposed in the wrapper.
    s = lax.dot_general(
        row_ref[...], key_ref[...],
        dimension_numbers=(((1,), (0,)), ((), ())),
        preferred_element_type=jnp.float32,
    ) * inv_temp

    # Boolean predicates from cheap 1-D iotas (no (N,N) int mods, no f32 masks).
    row_g = i * block_rows + lax.broadcasted_iota(jnp.int32, (block_rows, 1), 0)
    col_g = lax.broadcasted_iota(jnp.int32, (1, n_total), 1)
    same_sample = (row_g % batch_size) == (col_g % batch_size)   # (TM, N) bool
    positive = same_sample & (row_g != col_g)                    # (TM, N) bool

    # The row-max shift cancels exactly in the reduced form; only keep it when exp(s)
    # could overflow f32 (static, trace-time decision on 1/temperature).
    if apply_max_shift:
        logits = s - jnp.max(s, axis=1, keepdims=True)
    else:
        logits = s

    # per_row = log(sum_{not same_sample} exp(logits)) - sum_{positive}(logits)/(n_views-1)
    denom = jnp.sum(jnp.where(same_sample, 0.0, jnp.exp(logits)),
                    axis=1, keepdims=True)                        # (TM, 1)
    pos_sum = jnp.sum(jnp.where(positive, logits, 0.0),
                      axis=1, keepdims=True)                      # (TM, 1)
    per_row = jnp.log(denom) - pos_sum * inv_pos                  # (TM, 1)

    # Lane-dense (1, 1, 128) partial-sum tile for this row block (unmasked vst).
    out_ref[...] = jnp.broadcast_to(jnp.sum(per_row), (1, 1, 128)).astype(jnp.float32)


def con_mean_shift_loss(knn_emb, features, *, n_views: int,
                        alpha: float, temperature: float):
    n, d = features.shape
    assert knn_emb.shape == (n, d)
    assert n % n_views == 0
    assert n_views >= 2, "n_views must be >= 2 (pos_count = n_views - 1)"
    batch_size = n // n_views

    # ---- Hoisted prep (once, plain XLA): mean-shift + L2 normalize (f32) -> bf16.
    a = float(alpha)
    m = (1.0 - a) * features.astype(jnp.float32) + a * knn_emb.astype(jnp.float32)
    m = m * lax.rsqrt(jnp.sum(m * m, axis=-1, keepdims=True))  # no eps, matches torch ref
    # Zero-pad the contraction dim to a 128-multiple (MXU/lane alignment; dots unchanged).
    d_pad = d if d % 128 == 0 else ((d // 128) + 1) * 128
    if d_pad != d:
        m = jnp.pad(m, ((0, 0), (0, d_pad - d)))
    m_q = m.astype(jnp.bfloat16)       # (N, Dp)  query side, row-blocked
    m_k = m_q.T                        # (Dp, N)  key side, resident, pre-transposed

    tm_cap, vmem_limit = _vmem_params()
    tm = _pick_block_rows(n, tm_cap)
    grid = (n // tm,)

    inv_temp = 1.0 / float(temperature)
    # |cos| <= ~1 (plus bf16 slop); keep the shift only if exp could overflow f32 (~88).
    apply_max_shift = (1.05 * inv_temp) >= 80.0

    kernel = functools.partial(
        _cms_loss_kernel,
        batch_size=batch_size,
        n_views=n_views,
        inv_temp=inv_temp,
        block_rows=tm,
        n_total=n,
        apply_max_shift=apply_max_shift,
    )

    def _call(key_spec):
        return pl.pallas_call(
            kernel,
            out_shape=jax.ShapeDtypeStruct((grid[0], 1, 128), jnp.float32),
            grid=grid,
            in_specs=[
                key_spec,                                     # (Dp, N) resident key
                pl.BlockSpec((tm, d_pad), lambda i: (i, 0)),  # (TM, Dp) query row block
            ],
            out_specs=pl.BlockSpec((1, 1, 128), lambda i: (i, 0, 0)),
            compiler_params=pltpu.CompilerParams(
                dimension_semantics=("parallel",),  # independent row blocks (megacore)
                vmem_limit_bytes=vmem_limit,
            ),
        )(m_k, m_q)

    try:
        # Constant index_map -> never refetched; single-buffer halves resident VMEM.
        partials = _call(pl.BlockSpec((d_pad, n), lambda i: (0, 0),
                                      pipeline_mode=pl.Buffered(1)))
    except Exception:
        # Fallback for JAX versions without Buffered(1) support on resident inputs.
        partials = _call(pl.BlockSpec((d_pad, n), lambda i: (0, 0)))

    # loss.view(n_views, batch_size).mean() == mean over all N rows.
    return jnp.sum(partials[:, 0, 0]) / float(n)


def _reference(knn_emb, features, *, n_views, alpha, temperature):
    """Pure-JAX f32 reference mirroring the PyTorch forward."""
    n, _ = features.shape
    batch_size = n // n_views
    eye_b = jnp.eye(batch_size, dtype=jnp.float32)
    positive_mask = jnp.tile(eye_b, (n_views, n_views))
    negative_mask = jnp.where(positive_mask > 0, 0.0, 1.0)
    self_mask = jnp.eye(n, dtype=jnp.float32)
    positive_mask = jnp.where(self_mask > 0, 0.0, positive_mask)

    m = (1.0 - alpha) * features + alpha * knn_emb
    norm = jnp.sqrt(jnp.sum(m ** 2, axis=-1))[:, None]
    m = m / norm
    adc = (m @ m.T) / temperature
    logits = adc - jnp.max(adc, axis=1, keepdims=True)
    exp_logits = jnp.exp(logits) * negative_mask
    log_prob = logits - jnp.log(jnp.sum(exp_logits, axis=1, keepdims=True))
    loss = -(jnp.sum(positive_mask * log_prob, axis=1) / jnp.sum(positive_mask, axis=1))
    return jnp.mean(loss)


if __name__ == "__main__":
    # args: n_views=2, alpha=0.5, temperature=0.1
    n_views = 2
    alpha = 0.5
    temperature = 0.1
    batch_size = 4
    hidden = 32
    n = batch_size * n_views

    key = jax.random.PRNGKey(0)
    k1, k2 = jax.random.split(key)
    features = jax.random.normal(k1, (n, hidden), dtype=jnp.float32)
    knn_emb = jax.random.normal(k2, (n, hidden), dtype=jnp.float32)

    loss = con_mean_shift_loss(
        knn_emb, features, n_views=n_views, alpha=alpha, temperature=temperature
    )
    loss = jax.block_until_ready(loss)

    ref = _reference(
        knn_emb, features, n_views=n_views, alpha=alpha, temperature=temperature
    )
    # bf16 Gram-matrix path (f32 accumulation) -> slightly looser tolerance vs the f32 ref.
    assert jnp.allclose(loss, ref, rtol=5e-2, atol=5e-2), (loss, ref)

    print("KERNEL_OK")
</pallas_src>

<mosaic_0001>
module attributes {stable_mosaic.version = 11 : i64} {
  func.func @_cms_loss_kernel(%arg0: i32, %arg1: memref<128x8xbf16, #tpu.memory_space<vmem>>, %arg2: memref<8x128xbf16, #tpu.memory_space<vmem>>, %arg3: memref<1x1x128xf32, #tpu.memory_space<vmem>>) attributes {dimension_semantics = [#tpu.dimension_semantics<parallel>], iteration_bounds = array<i64: 1>, scalar_prefetch = 0 : i64, scratch_operands = 0 : i64, tpu.core_type = #tpu.core_type<tc>, window_params = [{pipeline_mode = #tpu.pipeline_mode<synchronous>, transform_indices = @transform_0, window_bounds = array<i64: 128, 8>}, {transform_indices = @transform_1, window_bounds = array<i64: 8, 128>}, {transform_indices = @transform_2, window_bounds = array<i64: 1, 1, 128>}]} {
    %c0 = arith.constant 0 : index
    %c0_0 = arith.constant 0 : index
    %0 = vector.load %arg2[%c0, %c0_0] : memref<8x128xbf16, #tpu.memory_space<vmem>>, vector<8x128xbf16>
    %c0_1 = arith.constant 0 : index
    %c0_2 = arith.constant 0 : index
    %1 = vector.load %arg1[%c0_1, %c0_2] : memref<128x8xbf16, #tpu.memory_space<vmem>>, vector<128x8xbf16>
    %cst = arith.constant dense<0.000000e+00> : vector<8x8xf32>
    %2 = tpu.matmul %0, %1, %cst {dimension_numbers = #tpu.dot_dimension_numbers<[1], [0], [0], [1], [0, 0, 1, 1], [], []>} : vector<8x128xbf16>, vector<128x8xbf16>, vector<8x8xf32> -> vector<8x8xf32>
    %cst_3 = arith.constant 1.000000e+01 : f32
    %3 = vector.broadcast %cst_3 : f32 to vector<8x8xf32>
    %4 = arith.mulf %2, %3 : vector<8x8xf32>
    %c8_i32 = arith.constant 8 : i32
    %5 = arith.muli %arg0, %c8_i32 : i32
    %6 = tpu.iota {dimensions = array<i32: 0>} : vector<8x1xi32>
    %7 = vector.broadcast %5 : i32 to vector<8x1xi32>
    %8 = arith.addi %7, %6 : vector<8x1xi32>
    %9 = tpu.iota {dimensions = array<i32: 1>} : vector<1x8xi32>
    %c4_i32 = arith.constant 4 : i32
    %c0_i32 = arith.constant 0 : i32
    %10 = arith.cmpi eq, %c4_i32, %c0_i32 : i32
    %c1_i32 = arith.constant 1 : i32
    %11 = arith.select %10, %c1_i32, %c4_i32 : i32
    %12 = vector.broadcast %11 : i32 to vector<8x1xi32>
    %13 = arith.remsi %8, %12 : vector<8x1xi32>
    %c0_i32_4 = arith.constant 0 : i32
    %14 = vector.broadcast %c0_i32_4 : i32 to vector<8x1xi32>
    %15 = arith.cmpi ne, %13, %14 : vector<8x1xi32>
    %c0_i32_5 = arith.constant 0 : i32
    %16 = vector.broadcast %c0_i32_5 : i32 to vector<8x1xi32>
    %17 = arith.cmpi slt, %13, %16 : vector<8x1xi32>
    %c0_i32_6 = arith.constant 0 : i32
    %18 = arith.cmpi slt, %11, %c0_i32_6 : i32
    %19 = vector.broadcast %18 : i1 to vector<8x1xi1>
    %20 = vector.broadcast %19 : vector<8x1xi1> to vector<8x1xi1>
    %21 = arith.xori %17, %20 : vector<8x1xi1>
    %22 = arith.andi %21, %15 : vector<8x1xi1>
    %23 = vector.broadcast %11 : i32 to vector<8x1xi32>
    %24 = arith.addi %13, %23 : vector<8x1xi32>
    %25 = arith.select %22, %24, %13 : vector<8x1xi1>, vector<8x1xi32>
    %c4_i32_7 = arith.constant 4 : i32
    %c0_i32_8 = arith.constant 0 : i32
    %26 = arith.cmpi eq, %c4_i32_7, %c0_i32_8 : i32
    %c1_i32_9 = arith.constant 1 : i32
    %27 = arith.select %26, %c1_i32_9, %c4_i32_7 : i32
    %28 = vector.broadcast %27 : i32 to vector<1x8xi32>
    %29 = arith.remsi %9, %28 : vector<1x8xi32>
    %c0_i32_10 = arith.constant 0 : i32
    %30 = vector.broadcast %c0_i32_10 : i32 to vector<1x8xi32>
    %31 = arith.cmpi ne, %29, %30 : vector<1x8xi32>
    %c0_i32_11 = arith.constant 0 : i32
    %32 = vector.broadcast %c0_i32_11 : i32 to vector<1x8xi32>
    %33 = arith.cmpi slt, %29, %32 : vector<1x8xi32>
    %c0_i32_12 = arith.constant 0 : i32
    %34 = arith.cmpi slt, %27, %c0_i32_12 : i32
    %35 = vector.broadcast %34 : i1 to vector<1x8xi1>
    %36 = vector.broadcast %35 : vector<1x8xi1> to vector<1x8xi1>
    %37 = arith.xori %33, %36 : vector<1x8xi1>
    %38 = arith.andi %37, %31 : vector<1x8xi1>
    %39 = vector.broadcast %27 : i32 to vector<1x8xi32>
    %40 = arith.addi %29, %39 : vector<1x8xi32>
    %41 = arith.select %38, %40, %29 : vector<1x8xi1>, vector<1x8xi32>
    %42 = vector.broadcast %25 : vector<8x1xi32> to vector<8x8xi32>
    %43 = vector.broadcast %41 : vector<1x8xi32> to vector<8x8xi32>
    %44 = arith.cmpi eq, %42, %43 : vector<8x8xi32>
    %45 = vector.broadcast %8 : vector<8x1xi32> to vector<8x8xi32>
    %46 = vector.broadcast %9 : vector<1x8xi32> to vector<8x8xi32>
    %47 = arith.cmpi ne, %45, %46 : vector<8x8xi32>
    %48 = arith.andi %44, %47 : vector<8x8xi1>
    %49 = math.exp %4 : vector<8x8xf32>
    %cst_13 = arith.constant 0.000000e+00 : f32
    %50 = vector.broadcast %cst_13 : f32 to vector<8x8xf32>
    %51 = arith.select %44, %50, %49 : vector<8x8xi1>, vector<8x8xf32>
    %cst_14 = arith.constant dense<0.000000e+00> : vector<8xf32>
    %52 = vector.multi_reduction <add>, %51, %cst_14 [1] : vector<8x8xf32> to vector<8xf32>
    %53 = vector.shape_cast %52 : vector<8xf32> to vector<8x1xf32>
    %cst_15 = arith.constant 0.000000e+00 : f32
    %54 = vector.broadcast %cst_15 : f32 to vector<8x8xf32>
    %55 = arith.select %48, %4, %54 : vector<8x8xi1>, vector<8x8xf32>
    %cst_16 = arith.constant dense<0.000000e+00> : vector<8xf32>
    %56 = vector.multi_reduction <add>, %55, %cst_16 [1] : vector<8x8xf32> to vector<8xf32>
    %57 = vector.shape_cast %56 : vector<8xf32> to vector<8x1xf32>
    %58 = math.log %53 : vector<8x1xf32>
    %cst_17 = arith.constant 1.000000e+00 : f32
    %59 = vector.broadcast %cst_17 : f32 to vector<8x1xf32>
    %60 = arith.mulf %57, %59 : vector<8x1xf32>
    %61 = arith.subf %58, %60 : vector<8x1xf32>
    %62 = vector.shape_cast %61 : vector<8x1xf32> to vector<1x8x1xf32>
    %cst_18 = arith.constant dense<0.000000e+00> : vector<1xf32>
    %63 = vector.multi_reduction <add>, %62, %cst_18 [1, 2] : vector<1x8x1xf32> to vector<1xf32>
    %64 = vector.shape_cast %63 : vector<1xf32> to vector<1x1x1xf32>
    %65 = vector.extract %64[0, 0, 0] : f32 from vector<1x1x1xf32>
    %66 = vector.broadcast %65 : f32 to vector<1x1x128xf32>
    %c0_19 = arith.constant 0 : index
    %c0_20 = arith.constant 0 : index
    %c0_21 = arith.constant 0 : index
    %67 = vector.load %arg3[%c0_19, %c0_20, %c0_21] : memref<1x1x128xf32, #tpu.memory_space<vmem>>, vector<1x1x128xf32>
    tpu.vector_store %arg3[%c0_19, %c0_20, %c0_21], %66 {strides = array<i32>} : memref<1x1x128xf32, #tpu.memory_space<vmem>>, vector<1x1x128xf32>,
    return
  }
  func.func @transform_0(%arg0: i32) -> (i32, i32) {
    %c0_i32 = arith.constant 0 : i32
    %c0_i32_0 = arith.constant 0 : i32
    %c0_i32_1 = arith.constant 0 : i32
    return %c0_i32, %c0_i32_0 : i32, i32
  }
  func.func @transform_1(%arg0: i32) -> (i32, i32) {
    %c0_i32 = arith.constant 0 : i32
    %c0_i32_0 = arith.constant 0 : i32
    return %arg0, %c0_i32 : i32, i32
  }
  func.func @transform_2(%arg0: i32) -> (i32, i32, i32) {
    %c0_i32 = arith.constant 0 : i32
    %c0_i32_0 = arith.constant 0 : i32
    %c0_i32_1 = arith.constant 0 : i32
    return %arg0, %c0_i32, %c0_i32_0 : i32, i32, i32
  }
}

module attributes {stable_mosaic.version = 11 : i64} {
  func.func @_cms_loss_kernel(%arg0: i32, %arg1: memref<128x8xbf16, #tpu.memory_space<vmem>>, %arg2: memref<8x128xbf16, #tpu.memory_space<vmem>>, %arg3: memref<1x1x128xf32, #tpu.memory_space<vmem>>) attributes {dimension_semantics = [#tpu.dimension_semantics<parallel>], iteration_bounds = array<i64: 1>, scalar_prefetch = 0 : i64, scratch_operands = 0 : i64, tpu.core_type = #tpu.core_type<tc>, window_params = [{pipeline_mode = #tpu.pipeline_mode<synchronous>, transform_indices = @transform_0, window_bounds = array<i64: 128, 8>}, {transform_indices = @transform_1, window_bounds = array<i64: 8, 128>}, {transform_indices = @transform_2, window_bounds = array<i64: 1, 1, 128>}]} {
    %c0 = arith.constant 0 : index
    %c0_0 = arith.constant 0 : index
    %0 = vector.load %arg2[%c0, %c0_0] : memref<8x128xbf16, #tpu.memory_space<vmem>>, vector<8x128xbf16>
    %c0_1 = arith.constant 0 : index
    %c0_2 = arith.constant 0 : index
    %1 = vector.load %arg1[%c0_1, %c0_2] : memref<128x8xbf16, #tpu.memory_space<vmem>>, vector<128x8xbf16>
    %cst = arith.constant dense<0.000000e+00> : vector<8x8xf32>
    %2 = tpu.matmul %0, %1, %cst {dimension_numbers = #tpu.dot_dimension_numbers<[1], [0], [0], [1], [0, 0, 1, 1], [], []>} : vector<8x128xbf16>, vector<128x8xbf16>, vector<8x8xf32> -> vector<8x8xf32>
    %cst_3 = arith.constant 1.000000e+01 : f32
    %3 = vector.broadcast %cst_3 : f32 to vector<8x8xf32>
    %4 = arith.mulf %2, %3 : vector<8x8xf32>
    %c8_i32 = arith.constant 8 : i32
    %5 = arith.muli %arg0, %c8_i32 : i32
    %6 = tpu.iota {dimensions = array<i32: 0>} : vector<8x1xi32>
    %7 = vector.broadcast %5 : i32 to vector<8x1xi32>
    %8 = arith.addi %7, %6 : vector<8x1xi32>
    %9 = tpu.iota {dimensions = array<i32: 1>} : vector<1x8xi32>
    %c4_i32 = arith.constant 4 : i32
    %c0_i32 = arith.constant 0 : i32
    %10 = arith.cmpi eq, %c4_i32, %c0_i32 : i32
    %c1_i32 = arith.constant 1 : i32
    %11 = arith.select %10, %c1_i32, %c4_i32 : i32
    %12 = vector.broadcast %11 : i32 to vector<8x1xi32>
    %13 = arith.remsi %8, %12 : vector<8x1xi32>
    %c0_i32_4 = arith.constant 0 : i32
    %14 = vector.broadcast %c0_i32_4 : i32 to vector<8x1xi32>
    %15 = arith.cmpi ne, %13, %14 : vector<8x1xi32>
    %c0_i32_5 = arith.constant 0 : i32
    %16 = vector.broadcast %c0_i32_5 : i32 to vector<8x1xi32>
    %17 = arith.cmpi slt, %13, %16 : vector<8x1xi32>
    %c0_i32_6 = arith.constant 0 : i32
    %18 = arith.cmpi slt, %11, %c0_i32_6 : i32
    %19 = vector.broadcast %18 : i1 to vector<8x1xi1>
    %20 = vector.broadcast %19 : vector<8x1xi1> to vector<8x1xi1>
    %21 = arith.xori %17, %20 : vector<8x1xi1>
    %22 = arith.andi %21, %15 : vector<8x1xi1>
    %23 = vector.broadcast %11 : i32 to vector<8x1xi32>
    %24 = arith.addi %13, %23 : vector<8x1xi32>
    %25 = arith.select %22, %24, %13 : vector<8x1xi1>, vector<8x1xi32>
    %c4_i32_7 = arith.constant 4 : i32
    %c0_i32_8 = arith.constant 0 : i32
    %26 = arith.cmpi eq, %c4_i32_7, %c0_i32_8 : i32
    %c1_i32_9 = arith.constant 1 : i32
    %27 = arith.select %26, %c1_i32_9, %c4_i32_7 : i32
    %28 = vector.broadcast %27 : i32 to vector<1x8xi32>
    %29 = arith.remsi %9, %28 : vector<1x8xi32>
    %c0_i32_10 = arith.constant 0 : i32
    %30 = vector.broadcast %c0_i32_10 : i32 to vector<1x8xi32>
    %31 = arith.cmpi ne, %29, %30 : vector<1x8xi32>
    %c0_i32_11 = arith.constant 0 : i32
    %32 = vector.broadcast %c0_i32_11 : i32 to vector<1x8xi32>
    %33 = arith.cmpi slt, %29, %32 : vector<1x8xi32>
    %c0_i32_12 = arith.constant 0 : i32
    %34 = arith.cmpi slt, %27, %c0_i32_12 : i32
    %35 = vector.broadcast %34 : i1 to vector<1x8xi1>
    %36 = vector.broadcast %35 : vector<1x8xi1> to vector<1x8xi1>
    %37 = arith.xori %33, %36 : vector<1x8xi1>
    %38 = arith.andi %37, %31 : vector<1x8xi1>
    %39 = vector.broadcast %27 : i32 to vector<1x8xi32>
    %40 = arith.addi %29, %39 : vector<1x8xi32>
    %41 = arith.select %38, %40, %29 : vector<1x8xi1>, vector<1x8xi32>
    %42 = vector.broadcast %25 : vector<8x1xi32> to vector<8x8xi32>
    %43 = vector.broadcast %41 : vector<1x8xi32> to vector<8x8xi32>
    %44 = arith.cmpi eq, %42, %43 : vector<8x8xi32>
    %45 = vector.broadcast %8 : vector<8x1xi32> to vector<8x8xi32>
    %46 = vector.broadcast %9 : vector<1x8xi32> to vector<8x8xi32>
    %47 = arith.cmpi ne, %45, %46 : vector<8x8xi32>
    %48 = arith.andi %44, %47 : vector<8x8xi1>
    %49 = math.exp %4 : vector<8x8xf32>
    %cst_13 = arith.constant 0.000000e+00 : f32
    %50 = vector.broadcast %cst_13 : f32 to vector<8x8xf32>
    %51 = arith.select %44, %50, %49 : vector<8x8xi1>, vector<8x8xf32>
    %cst_14 = arith.constant dense<0.000000e+00> : vector<8xf32>
    %52 = vector.multi_reduction <add>, %51, %cst_14 [1] : vector<8x8xf32> to vector<8xf32>
    %53 = vector.shape_cast %52 : vector<8xf32> to vector<8x1xf32>
    %cst_15 = arith.constant 0.000000e+00 : f32
    %54 = vector.broadcast %cst_15 : f32 to vector<8x8xf32>
    %55 = arith.select %48, %4, %54 : vector<8x8xi1>, vector<8x8xf32>
    %cst_16 = arith.constant dense<0.000000e+00> : vector<8xf32>
    %56 = vector.multi_reduction <add>, %55, %cst_16 [1] : vector<8x8xf32> to vector<8xf32>
    %57 = vector.shape_cast %56 : vector<8xf32> to vector<8x1xf32>
    %58 = math.log %53 : vector<8x1xf32>
    %cst_17 = arith.constant 1.000000e+00 : f32
    %59 = vector.broadcast %cst_17 : f32 to vector<8x1xf32>
    %60 = arith.mulf %57, %59 : vector<8x1xf32>
    %61 = arith.subf %58, %60 : vector<8x1xf32>
    %62 = vector.shape_cast %61 : vector<8x1xf32> to vector<1x8x1xf32>
    %cst_18 = arith.constant dense<0.000000e+00> : vector<1xf32>
    %63 = vector.multi_reduction <add>, %62, %cst_18 [1, 2] : vector<1x8x1xf32> to vector<1xf32>
    %64 = vector.shape_cast %63 : vector<1xf32> to vector<1x1x1xf32>
    %65 = vector.extract %64[0, 0, 0] : f32 from vector<1x1x1xf32>
    %66 = vector.broadcast %65 : f32 to vector<1x1x128xf32>
    %c0_19 = arith.constant 0 : index
    %c0_20 = arith.constant 0 : index
    %c0_21 = arith.constant 0 : index
    %67 = vector.load %arg3[%c0_19, %c0_20, %c0_21] : memref<1x1x128xf32, #tpu.memory_space<vmem>>, vector<1x1x128xf32>
    tpu.vector_store %arg3[%c0_19, %c0_20, %c0_21], %66 {strides = array<i32>} : memref<1x1x128xf32, #tpu.memory_space<vmem>>, vector<1x1x128xf32>,
    return
  }
  func.func @transform_0(%arg0: i32) -> (i32, i32) {
    %c0_i32 = arith.constant 0 : i32
    %c0_i32_0 = arith.constant 0 : i32
    %c0_i32_1 = arith.constant 0 : i32
    return %c0_i32, %c0_i32_0 : i32, i32
  }
  func.func @transform_1(%arg0: i32) -> (i32, i32) {
    %c0_i32 = arith.constant 0 : i32
    %c0_i32_0 = arith.constant 0 : i32
    return %arg0, %c0_i32 : i32, i32
  }
  func.func @transform_2(%arg0: i32) -> (i32, i32, i32) {
    %c0_i32 = arith.constant 0 : i32
    %c0_i32_0 = arith.constant 0 : i32
    %c0_i32_1 = arith.constant 0 : i32
    return %arg0, %c0_i32, %c0_i32_0 : i32, i32, i32
  }
}

</mosaic_0001>

<bundles_post_ra>
// kernel: tpu_custom_call.1
= control target key start
LH: loop header
LB: loop body
LE: loop exit
PB: predicated region body
PF: predicated region fallthrough
CT: control target
= control target key end

     0   :  { %v270_v1 = vmov 0.0   ;;  %vm271_vm0 = vmmov 0   ;;  %s318_s0 = inlined_call_operand.vmem [shape: bf16[128,8], index: 0, kind: input, shape index: {}]   ;;  %s319_s1 = inlined_call_operand.vmem [shape: bf16[8,128], index: 1, kind: input, shape index: {}]   ;;  %s320_s2 = inlined_call_operand.hbm [shape: f32[1,1,128], index: 2, kind: output, shape index: {}]  }
   0x1   :  { %v236_v0 = vld [vmem:[%s318_s0 + $0x38] sm:$0xff]   ;;  %211 = vmatprep.subr.bf16.mxu0 %v270_v1  ;;  %v237_v2 = vld [vmem:[%s318_s0 + $0x30] sm:$0xff]   ;;  %227 = vmatprep.mubr.msk.bf16.mxu0 %vm271_vm0, %v270_v1  ;;  %v238_v3 = vld [vmem:[%s318_s0 + $0x28] sm:$0xff]  }
   0x2   :  { %212 = vmatpush3.bf16.msra.mxu0 %v236_v0 }
   0x3   :  { %213 = vmatprep.subr.bf16.mxu0 %v270_v1 }
   0x6   :  { %214 = vmatpush3.bf16.msra.mxu0 %v237_v2 }
   0x7   :  { %215 = vmatprep.subr.bf16.mxu0 %v270_v1 }
   0x8   :  { %7 = vsyncpa [#allocation3], 0  ;;  %v239_v4 = vld [vmem:[%s318_s0 + $0x20] sm:$0xff]   ;;  %v240_v5 = vld [vmem:[%s318_s0 + $0x18] sm:$0xff]   ;;  %v120_v14 = vlaneseq  ;;  %vm156_vm4 = vcmask 64512   ;;  %vm167_vm5 = vcmask 7168  }
   0x9   :  { %v241_v6 = vld [vmem:[%s318_s0 + $0x10] sm:$0xff]   ;;  %v242_v7 = vld [vmem:[%s318_s0 + $0x8] sm:$0xff]   ;;  %v243_v8 = vld [vmem:[%s318_s0] sm:$0xff]   ;;  %s272_s0 = smov [#allocation2]  }
   0xa   :  { %216 = vmatpush3.bf16.msra.mxu0 %v238_v3  ;;  %v13_v9 = vld [vmem:[%s319_s1] sm:$0xf]  ;;  %v121_v17 = vshrl.u32 %v120_v14, 7  ;;  %v125_v18 = vand.u32 127, %v120_v14  ;;  %s186_s1 = sshll.u32 %s272_s0, 4  ;;  %s187_s1 = int_to_ptr.vmem [resolvable:$true] %s186_s1 }
   0xb   :  { %217 = vmatprep.subr.bf16.mxu0 %v270_v1  ;;  %s248_s28 = scalar_lea.vmem %s187_s1, 16  ;;  %s252_s29 = scalar_lea.vmem %s187_s1, 32 }
   0xc   :  { %v130_v19 = vand.u32 3, %v121_v17  ;;  %v142_v20 = vand.u32 3, %v125_v18  ;;  %vm151_vm2 = vcmp.ne.s32.totalorder %v121_v17, %v125_v18  ;;  %p249_p0 = scmp.ne.s32.totalorder %s187_s1, %s248_s28  ;;  %p253_p1 = scmp.lt.s32.totalorder %s187_s1, %s187_s1 }
   0xd   :  { %p254_p2 = scmp.lt.s32.totalorder %s252_s29, %s248_s28 }
   0xe   :  { %218 = vmatpush3.bf16.msra.mxu0 %v239_v4  ;;  %vm150_vm1 = vcmp.eq.s32.totalorder %v130_v19, %v142_v20 }
   0xf   :  { %219 = vmatprep.subr.bf16.mxu0 %v270_v1  ;;  %vm152_vm3 = vmand %vm150_vm1, %vm151_vm2  ;;  %p255_p3 = por %p254_p2, %p253_p1 }
  0x11   :  { %p256_p4 = pnand %p255_p3, %p249_p0 }
  0x12   :  { %220 = vmatpush3.bf16.msra.mxu0 %v240_v5 }
  0x13   :  { %221 = vmatprep.subr.bf16.mxu0 %v270_v1 }
  0x16   :  { %222 = vmatpush3.bf16.msra.mxu0 %v241_v6 }
  0x17   :  { %223 = vmatprep.subr.bf16.mxu0 %v270_v1 }
  0x1a   :  { %224 = vmatpush3.bf16.msra.mxu0 %v242_v7 }
  0x1b   :  { %225 = vmatprep.subr.bf16.mxu0 %v270_v1 }
  0x1e   :  { %226 = vmatpush3.bf16.msra.mxu0 %v243_v8 }
  0x21   :  { %228 = vmatmul.mubr.bf16.vlgmr.msra.gmra.mxu0 %v13_v9 }
  0xe1   :  { %v112_v10 = vpop.f32.mrf.mxu0 }
  0xe2   :  { %v118_v11 = vmul.f32 10.0, %v112_v10 }
  0xe3   :  { %v229_v12 = vpop.f32.mrf.mxu0 }
  0xe4   :  { %v153_v13 = vmul.f32 1.442695, %v118_v11  ;;  %v160_v24 = vsel %vm152_vm3, %v118_v11, 0.0 }
  0xe5   :  { %v115_v15 = vpop.f32.mrf.mxu0  ;;  %v161_v25 = vsel %vm156_vm4, %v160_v24, 0.0 }
  0xe6   :  { %244 = vpow2.f32 %v153_v13 }
  0xe7   :  { %v230_v16 = vpop.f32.mrf.mxu0 }
  0xf3   :  { %v245_v21 = vpop.eup %244 }
  0xf4   :  { %v155_v22 = vsel %vm150_vm1, 0.0, %v245_v21 }
  0xf5   :  { %v157_v23 = vsel %vm156_vm4, %v155_v22, 0.0 }
  0xf6   :  { %158 = vadd.xlane.f32.xlu0 %v157_v23 }
  0xfa   :  { %162 = vadd.xlane.f32.xlu0 %v161_v25 }
 0x17f   :  { %v159_v26 = vpop.xlane.xlu0 %158 }
 0x180   :  { %246 = vlog2.f32 %v159_v26 }
 0x183   :  { %v163_v29 = vpop.xlane.xlu0 %162 }
 0x18d   :  { %v247_v27 = vpop.eup %246 }
 0x18e   :  { %v165_v28 = vmul.f32 0.6931472, %v247_v27 }
 0x190   :  { %v166_v30 = vsub.f32 %v165_v28, %v163_v29 }
 0x192   :  { %v168_v31 = vsel %vm167_vm5, %v166_v30, 0.0 }
 0x193   :  { %169 = vadd.xlane.f32.xlu1 %v168_v31 }
 0x21c   :  { %v170_v32 = vpop.xlane.xlu1 %169 }
 0x21d   :  { %v171_v33 = vrot.slane %v170_v32, 4 }
 0x21f   :  { %v172_v34 = vadd.f32 %v171_v33, %v170_v32 }
 0x221   :  { %v173_v35 = vrot.slane %v172_v34, 2 }
 0x223   :  { %v174_v36 = vadd.f32 %v173_v35, %v172_v34 }
 0x225   :  { %v175_v37 = vrot.slane %v174_v36, 1 }
 0x227   :  { %v176_v38 = vadd.f32 %v175_v37, %v174_v36 }
 0x229   :  { %231 = vpush %v176_v38 }
 0x25a   :  { %s232_s27 = spop %231 }
 0x25b   :  { %v178_v39 = vstv %s232_s27 }
 0x25c   :  { %179 = vst [vmem:[#allocation2] sm:$0x1] %v178_v39 }
 0x25d   :  { %259 = shalt.err (!%p256_p4)
}
 0x25e   :  { %189 = dma.vmem_to_hbm [thread:$0]  %s187_s1, 16, %s320_s2, [#allocation3]  }
 0x25f   :  { %268 = dma.done.wait [#allocation3], 16  }
 0x260   :  { %269 = vsyncadd [#allocation3], 4294967280 }
 0x261   :  { %193 = vsyncpa [#allocation3], 1 }

// kernel: tpu_custom_call.1
= control target key start
LH: loop header
LB: loop body
LE: loop exit
PB: predicated region body
PF: predicated region fallthrough
CT: control target
= control target key end

     0   :  { %v270_v1 = vmov 0.0   ;;  %vm271_vm0 = vmmov 0   ;;  %s318_s0 = inlined_call_operand.vmem [shape: bf16[128,8], index: 0, kind: input, shape index: {}]   ;;  %s319_s1 = inlined_call_operand.vmem [shape: bf16[8,128], index: 1, kind: input, shape index: {}]   ;;  %s320_s2 = inlined_call_operand.hbm [shape: f32[1,1,128], index: 2, kind: output, shape index: {}]  }
   0x1   :  { %v236_v0 = vld [vmem:[%s318_s0 + $0x38] sm:$0xff]   ;;  %211 = vmatprep.subr.bf16.mxu0 %v270_v1  ;;  %v237_v2 = vld [vmem:[%s318_s0 + $0x30] sm:$0xff]   ;;  %227 = vmatprep.mubr.msk.bf16.mxu0 %vm271_vm0, %v270_v1  ;;  %v238_v3 = vld [vmem:[%s318_s0 + $0x28] sm:$0xff]  }
   0x2   :  { %212 = vmatpush3.bf16.msra.mxu0 %v236_v0 }
   0x3   :  { %213 = vmatprep.subr.bf16.mxu0 %v270_v1 }
   0x6   :  { %214 = vmatpush3.bf16.msra.mxu0 %v237_v2 }
   0x7   :  { %215 = vmatprep.subr.bf16.mxu0 %v270_v1 }
   0x8   :  { %7 = vsyncpa [#allocation3], 0  ;;  %v239_v4 = vld [vmem:[%s318_s0 + $0x20] sm:$0xff]   ;;  %v240_v5 = vld [vmem:[%s318_s0 + $0x18] sm:$0xff]   ;;  %v120_v14 = vlaneseq  ;;  %vm156_vm4 = vcmask 64512   ;;  %vm167_vm5 = vcmask 7168  }
   0x9   :  { %v241_v6 = vld [vmem:[%s318_s0 + $0x10] sm:$0xff]   ;;  %v242_v7 = vld [vmem:[%s318_s0 + $0x8] sm:$0xff]   ;;  %v243_v8 = vld [vmem:[%s318_s0] sm:$0xff]   ;;  %s272_s0 = smov [#allocation2]  }
   0xa   :  { %216 = vmatpush3.bf16.msra.mxu0 %v238_v3  ;;  %v13_v9 = vld [vmem:[%s319_s1] sm:$0xf]  ;;  %v121_v17 = vshrl.u32 %v120_v14, 7  ;;  %v125_v18 = vand.u32 127, %v120_v14  ;;  %s186_s1 = sshll.u32 %s272_s0, 4  ;;  %s187_s1 = int_to_ptr.vmem [resolvable:$true] %s186_s1 }
   0xb   :  { %217 = vmatprep.subr.bf16.mxu0 %v270_v1  ;;  %s248_s28 = scalar_lea.vmem %s187_s1, 16  ;;  %s252_s29 = scalar_lea.vmem %s187_s1, 32 }
   0xc   :  { %v130_v19 = vand.u32 3, %v121_v17  ;;  %v142_v20 = vand.u32 3, %v125_v18  ;;  %vm151_vm2 = vcmp.ne.s32.totalorder %v121_v17, %v125_v18  ;;  %p249_p0 = scmp.ne.s32.totalorder %s187_s1, %s248_s28  ;;  %p253_p1 = scmp.lt.s32.totalorder %s187_s1, %s187_s1 }
   0xd   :  { %p254_p2 = scmp.lt.s32.totalorder %s252_s29, %s248_s28 }
   0xe   :  { %218 = vmatpush3.bf16.msra.mxu0 %v239_v4  ;;  %vm150_vm1 = vcmp.eq.s32.totalorder %v130_v19, %v142_v20 }
   0xf   :  { %219 = vmatprep.subr.bf16.mxu0 %v270_v1  ;;  %vm152_vm3 = vmand %vm150_vm1, %vm151_vm2  ;;  %p255_p3 = por %p254_p2, %p253_p1 }
  0x11   :  { %p256_p4 = pnand %p255_p3, %p249_p0 }
  0x12   :  { %220 = vmatpush3.bf16.msra.mxu0 %v240_v5 }
  0x13   :  { %221 = vmatprep.subr.bf16.mxu0 %v270_v1 }
  0x16   :  { %222 = vmatpush3.bf16.msra.mxu0 %v241_v6 }
  0x17   :  { %223 = vmatprep.subr.bf16.mxu0 %v270_v1 }
  0x1a   :  { %224 = vmatpush3.bf16.msra.mxu0 %v242_v7 }
  0x1b   :  { %225 = vmatprep.subr.bf16.mxu0 %v270_v1 }
  0x1e   :  { %226 = vmatpush3.bf16.msra.mxu0 %v243_v8 }
  0x21   :  { %228 = vmatmul.mubr.bf16.vlgmr.msra.gmra.mxu0 %v13_v9 }
  0xe1   :  { %v112_v10 = vpop.f32.mrf.mxu0 }
  0xe2   :  { %v118_v11 = vmul.f32 10.0, %v112_v10 }
  0xe3   :  { %v229_v12 = vpop.f32.mrf.mxu0 }
  0xe4   :  { %v153_v13 = vmul.f32 1.442695, %v118_v11  ;;  %v160_v24 = vsel %vm152_vm3, %v118_v11, 0.0 }
  0xe5   :  { %v115_v15 = vpop.f32.mrf.mxu0  ;;  %v161_v25 = vsel %vm156_vm4, %v160_v24, 0.0 }
  0xe6   :  { %244 = vpow2.f32 %v153_v13 }
  0xe7   :  { %v230_v16 = vpop.f32.mrf.mxu0 }
  0xf3   :  { %v245_v21 = vpop.eup %244 }
  0xf4   :  { %v155_v22 = vsel %vm150_vm1, 0.0, %v245_v21 }
  0xf5   :  { %v157_v23 = vsel %vm156_vm4, %v155_v22, 0.0 }
  0xf6   :  { %158 = vadd.xlane.f32.xlu0 %v157_v23 }
  0xfa   :  { %162 = vadd.xlane.f32.xlu0 %v161_v25 }
 0x17f   :  { %v159_v26 = vpop.xlane.xlu0 %158 }
 0x180   :  { %246 = vlog2.f32 %v159_v26 }
 0x183   :  { %v163_v29 = vpop.xlane.xlu0 %162 }
 0x18d   :  { %v247_v27 = vpop.eup %246 }
 0x18e   :  { %v165_v28 = vmul.f32 0.6931472, %v247_v27 }
 0x190   :  { %v166_v30 = vsub.f32 %v165_v28, %v163_v29 }
 0x192   :  { %v168_v31 = vsel %vm167_vm5, %v166_v30, 0.0 }
 0x193   :  { %169 = vadd.xlane.f32.xlu1 %v168_v31 }
 0x21c   :  { %v170_v32 = vpop.xlane.xlu1 %169 }
 0x21d   :  { %v171_v33 = vrot.slane %v170_v32, 4 }
 0x21f   :  { %v172_v34 = vadd.f32 %v171_v33, %v170_v32 }
 0x221   :  { %v173_v35 = vrot.slane %v172_v34, 2 }
 0x223   :  { %v174_v36 = vadd.f32 %v173_v35, %v172_v34 }
 0x225   :  { %v175_v37 = vrot.slane %v174_v36, 1 }
 0x227   :  { %v176_v38 = vadd.f32 %v175_v37, %v174_v36 }
 0x229   :  { %231 = vpush %v176_v38 }
 0x25a   :  { %s232_s27 = spop %231 }
 0x25b   :  { %v178_v39 = vstv %s232_s27 }
 0x25c   :  { %179 = vst [vmem:[#allocation2] sm:$0x1] %v178_v39 }
 0x25d   :  { %259 = shalt.err (!%p256_p4)
}
 0x25e   :  { %189 = dma.vmem_to_hbm [thread:$0]  %s187_s1, 16, %s320_s2, [#allocation3]  }
 0x25f   :  { %268 = dma.done.wait [#allocation3], 16  }
 0x260   :  { %269 = vsyncadd [#allocation3], 4294967280 }
 0x261   :  { %193 = vsyncpa [#allocation3], 1 }

</bundles_post_ra>
